<compile_context>
chip_gen: v7x
topology: tpu7x:2x2x1
jax: 0.10.0
libtpu: 0.0.40
codegen_flags: <defaults>
</compile_context>

<pallas_src>
import functools

import jax
import jax.numpy as jnp
from jax import lax
from jax.experimental import pallas as pl
from jax.experimental.pallas import tpu as pltpu

EPS = 1e-5  # nn.LayerNorm default


def patch_embed_kernel(x_ref, w_ref, b_ref, g_ref, bt_ref, o_ref):
    # x_ref: (TM, K) bf16 im2col tile, w_ref: (K, N) bf16 weight matrix,
    # b_ref/g_ref/bt_ref: (1, N) f32 conv bias / LN gamma / LN beta.
    acc = jnp.dot(x_ref[...], w_ref[...], preferred_element_type=jnp.float32)
    acc = acc + b_ref[...]
    # LayerNorm over embed_dim, biased variance (PyTorch semantics), f32 math.
    mean = jnp.mean(acc, axis=-1, keepdims=True)
    cen = acc - mean
    var = jnp.mean(cen * cen, axis=-1, keepdims=True)
    y = cen * lax.rsqrt(var + EPS)
    o_ref[...] = (y * g_ref[...] + bt_ref[...]).astype(o_ref.dtype)


def overlap_patch_embed(x, weight, bias, gamma, beta, *, patch_size=7, stride=4,
                        block_m=512, compute_dtype=jnp.bfloat16):
    """x: (B, Cin, H, W) NCHW.  weight: (Cout, Cin, kh, kw) OIHW (PyTorch layout)."""
    B, Cin, H, W = x.shape
    kh = kw = patch_size
    pad = patch_size // 2
    Ho = (H + 2 * pad - kh) // stride + 1
    Wo = (W + 2 * pad - kw) // stride + 1
    Cout = weight.shape[0]

    # --- im2col glue (plain JAX), built directly in row-major output order ---
    # NHWC view + spatial pad; per-tap strided slices stacked on a new axis give
    # (B, Ho, Wo, kh*kw, Cin), which reshapes to (M, K) with NO transpose of the
    # big col matrix.  Feature order along K is (i, j, c).
    x_nhwc = jnp.transpose(x, (0, 2, 3, 1))
    xp = jnp.pad(x_nhwc, ((0, 0), (pad, pad), (pad, pad), (0, 0)))
    taps = []
    for i in range(kh):
        for j in range(kw):
            taps.append(xp[:, i:i + stride * Ho:stride, j:j + stride * Wo:stride, :])
    col = jnp.stack(taps, axis=3).reshape(B * Ho * Wo, kh * kw * Cin)

    # Conv weight (Cout, Cin, kh, kw) -> (kh, kw, Cin, Cout) -> (K, N) to match
    # the (i, j, c) feature order above (tiny, done once).
    w2d = jnp.transpose(weight, (2, 3, 1, 0)).reshape(kh * kw * Cin, Cout)

    M = B * Ho * Wo
    K = kh * kw * Cin
    N = Cout

    # --- M tiling: multiple of 8, pad M up so every block is full ------------
    tm = max(8, min(block_m, ((M + 7) // 8) * 8))
    Mp = pl.cdiv(M, tm) * tm
    if Mp != M:
        col = jnp.pad(col, ((0, Mp - M), (0, 0)))

    # bf16 MXU inputs; bias / LN params stay f32.
    col_c = col.astype(compute_dtype)
    w2d_c = w2d.astype(compute_dtype)
    b_f32 = bias.astype(jnp.float32).reshape(1, N)
    g_f32 = gamma.astype(jnp.float32).reshape(1, N)
    bt_f32 = beta.astype(jnp.float32).reshape(1, N)

    itemsize_in = jnp.dtype(compute_dtype).itemsize
    itemsize_out = jnp.dtype(x.dtype).itemsize
    cost = pl.CostEstimate(
        flops=2 * Mp * K * N,
        transcendentals=0,
        bytes_accessed=Mp * K * itemsize_in + K * N * itemsize_in
        + Mp * N * itemsize_out,
    )

    out = pl.pallas_call(
        patch_embed_kernel,
        out_shape=jax.ShapeDtypeStruct((Mp, N), x.dtype),
        grid_spec=pltpu.PrefetchScalarGridSpec(
            num_scalar_prefetch=0,
            grid=(Mp // tm,),
            in_specs=[
                pl.BlockSpec((tm, K), lambda i: (i, 0)),   # streamed per block
                pl.BlockSpec((K, N), lambda i: (0, 0)),    # VMEM-resident
                pl.BlockSpec((1, N), lambda i: (0, 0)),
                pl.BlockSpec((1, N), lambda i: (0, 0)),
                pl.BlockSpec((1, N), lambda i: (0, 0)),
            ],
            out_specs=pl.BlockSpec((tm, N), lambda i: (i, 0)),
        ),
        compiler_params=pltpu.CompilerParams(
            dimension_semantics=("parallel",)),
        cost_estimate=cost,
    )(col_c, w2d_c, b_f32, g_f32, bt_f32)

    out = out[:M].reshape(B, Ho * Wo, N)
    return out, Ho, Wo


def overlap_patch_embed_ref(x, weight, bias, gamma, beta, *, patch_size=7, stride=4):
    """Pure-JAX f32 reference (lax.conv + LayerNorm) for correctness checking."""
    pad = patch_size // 2
    y = lax.conv_general_dilated(
        x, weight, window_strides=(stride, stride),
        padding=[(pad, pad), (pad, pad)],
        dimension_numbers=("NCHW", "OIHW", "NCHW"))
    y = y + bias[None, :, None, None]
    B, C, Ho, Wo = y.shape
    y = y.reshape(B, C, Ho * Wo).transpose(0, 2, 1)
    mean = y.mean(-1, keepdims=True)
    var = ((y - mean) ** 2).mean(-1, keepdims=True)
    y = (y - mean) / jnp.sqrt(var + EPS)
    return y * gamma + beta, Ho, Wo


if __name__ == "__main__":
    # Small shapes consistent with the module: OverlapPatchEmbed(img_size=16,
    # patch_size=7, stride=4, in_chans=4, embed_dim=32) applied to (2,4,16,16).
    B, Cin, Hs, Ws = 2, 4, 16, 16
    embed_dim, patch_size, stride = 32, 7, 4

    key = jax.random.PRNGKey(0)
    kx, kw, kb, kg, kbt = jax.random.split(key, 5)
    x = jax.random.normal(kx, (B, Cin, Hs, Ws), dtype=jnp.float32)
    weight = 0.02 * jax.random.normal(kw, (embed_dim, Cin, patch_size, patch_size),
                                      dtype=jnp.float32)
    bias = 0.01 * jax.random.normal(kb, (embed_dim,), dtype=jnp.float32)
    gamma = jnp.ones((embed_dim,), dtype=jnp.float32) \
        + 0.1 * jax.random.normal(kg, (embed_dim,), dtype=jnp.float32)
    beta = 0.1 * jax.random.normal(kbt, (embed_dim,), dtype=jnp.float32)

    fn = functools.partial(overlap_patch_embed, patch_size=patch_size, stride=stride)
    out, H, W = fn(x, weight, bias, gamma, beta)
    out = jax.block_until_ready(out)

    ref, H_ref, W_ref = overlap_patch_embed_ref(x, weight, bias, gamma, beta,
                                                patch_size=patch_size, stride=stride)
    assert out.shape == (B, H * W, embed_dim), out.shape
    assert (H, W) == (H_ref, W_ref)
    # bf16 MXU inputs with f32 accumulation + f32 LayerNorm: tolerance sized for
    # bf16 input rounding (output is LN-normalized, O(1) scale).
    max_err = float(jnp.max(jnp.abs(out.astype(jnp.float32) - ref)))
    assert jnp.allclose(out.astype(jnp.float32), ref, atol=5e-2, rtol=5e-2), max_err

    print("KERNEL_OK")
</pallas_src>

<mosaic_0001>
module attributes {stable_mosaic.version = 11 : i64} {
  func.func @patch_embed_kernel(%arg0: i32, %arg1: memref<32x196xbf16, #tpu.memory_space<vmem>>, %arg2: memref<196x32xbf16, #tpu.memory_space<vmem>>, %arg3: memref<1x32xf32, #tpu.memory_space<vmem>>, %arg4: memref<1x32xf32, #tpu.memory_space<vmem>>, %arg5: memref<1x32xf32, #tpu.memory_space<vmem>>, %arg6: memref<32x32xf32, #tpu.memory_space<vmem>>) attributes {dimension_semantics = [#tpu.dimension_semantics<parallel>], iteration_bounds = array<i64: 1>, scalar_prefetch = 0 : i64, scratch_operands = 0 : i64, tpu.core_type = #tpu.core_type<tc>, window_params = [{transform_indices = @transform_0, window_bounds = array<i64: 32, 196>}, {pipeline_mode = #tpu.pipeline_mode<synchronous>, transform_indices = @transform_1, window_bounds = array<i64: 196, 32>}, {pipeline_mode = #tpu.pipeline_mode<synchronous>, transform_indices = @transform_2, window_bounds = array<i64: 1, 32>}, {pipeline_mode = #tpu.pipeline_mode<synchronous>, transform_indices = @transform_3, window_bounds = array<i64: 1, 32>}, {pipeline_mode = #tpu.pipeline_mode<synchronous>, transform_indices = @transform_4, window_bounds = array<i64: 1, 32>}, {transform_indices = @transform_5, window_bounds = array<i64: 32, 32>}]} {
    %c0 = arith.constant 0 : index
    %c0_0 = arith.constant 0 : index
    %0 = vector.load %arg1[%c0, %c0_0] : memref<32x196xbf16, #tpu.memory_space<vmem>>, vector<32x196xbf16>
    %c0_1 = arith.constant 0 : index
    %c0_2 = arith.constant 0 : index
    %1 = vector.load %arg2[%c0_1, %c0_2] : memref<196x32xbf16, #tpu.memory_space<vmem>>, vector<196x32xbf16>
    %cst = arith.constant dense<0.000000e+00> : vector<32x32xf32>
    %2 = tpu.matmul %0, %1, %cst {dimension_numbers = #tpu.dot_dimension_numbers<[1], [0], [0], [1], [0, 0, 1, 1], [], []>} : vector<32x196xbf16>, vector<196x32xbf16>, vector<32x32xf32> -> vector<32x32xf32>
    %c0_3 = arith.constant 0 : index
    %c0_4 = arith.constant 0 : index
    %3 = vector.load %arg3[%c0_3, %c0_4] : memref<1x32xf32, #tpu.memory_space<vmem>>, vector<1x32xf32>
    %4 = vector.broadcast %3 : vector<1x32xf32> to vector<32x32xf32>
    %5 = arith.addf %2, %4 : vector<32x32xf32>
    %cst_5 = arith.constant dense<0.000000e+00> : vector<32xf32>
    %6 = vector.multi_reduction <add>, %5, %cst_5 [1] : vector<32x32xf32> to vector<32xf32>
    %7 = vector.shape_cast %6 : vector<32xf32> to vector<32x1xf32>
    %cst_6 = arith.constant 3.200000e+01 : f32
    %8 = vector.broadcast %cst_6 : f32 to vector<32x1xf32>
    %9 = arith.divf %7, %8 : vector<32x1xf32>
    %10 = vector.broadcast %9 : vector<32x1xf32> to vector<32x32xf32>
    %11 = arith.subf %5, %10 : vector<32x32xf32>
    %12 = arith.mulf %11, %11 : vector<32x32xf32>
    %cst_7 = arith.constant dense<0.000000e+00> : vector<32xf32>
    %13 = vector.multi_reduction <add>, %12, %cst_7 [1] : vector<32x32xf32> to vector<32xf32>
    %14 = vector.shape_cast %13 : vector<32xf32> to vector<32x1xf32>
    %cst_8 = arith.constant 3.200000e+01 : f32
    %15 = vector.broadcast %cst_8 : f32 to vector<32x1xf32>
    %16 = arith.divf %14, %15 : vector<32x1xf32>
    %cst_9 = arith.constant 9.99999974E-6 : f32
    %17 = vector.broadcast %cst_9 : f32 to vector<32x1xf32>
    %18 = arith.addf %16, %17 : vector<32x1xf32>
    %19 = math.rsqrt %18 : vector<32x1xf32>
    %20 = vector.broadcast %19 : vector<32x1xf32> to vector<32x32xf32>
    %21 = arith.mulf %11, %20 : vector<32x32xf32>
    %c0_10 = arith.constant 0 : index
    %c0_11 = arith.constant 0 : index
    %22 = vector.load %arg4[%c0_10, %c0_11] : memref<1x32xf32, #tpu.memory_space<vmem>>, vector<1x32xf32>
    %23 = vector.broadcast %22 : vector<1x32xf32> to vector<32x32xf32>
    %24 = arith.mulf %21, %23 : vector<32x32xf32>
    %c0_12 = arith.constant 0 : index
    %c0_13 = arith.constant 0 : index
    %25 = vector.load %arg5[%c0_12, %c0_13] : memref<1x32xf32, #tpu.memory_space<vmem>>, vector<1x32xf32>
    %26 = vector.broadcast %25 : vector<1x32xf32> to vector<32x32xf32>
    %27 = arith.addf %24, %26 : vector<32x32xf32>
    %c0_14 = arith.constant 0 : index
    %c0_15 = arith.constant 0 : index
    %28 = vector.load %arg6[%c0_14, %c0_15] : memref<32x32xf32, #tpu.memory_space<vmem>>, vector<32x32xf32>
    tpu.vector_store %arg6[%c0_14, %c0_15], %27 {strides = array<i32>} : memref<32x32xf32, #tpu.memory_space<vmem>>, vector<32x32xf32>,
    return
  }
  func.func @transform_0(%arg0: i32) -> (i32, i32) {
    %c0_i32 = arith.constant 0 : i32
    %c0_i32_0 = arith.constant 0 : i32
    return %arg0, %c0_i32 : i32, i32
  }
  func.func @transform_1(%arg0: i32) -> (i32, i32) {
    %c0_i32 = arith.constant 0 : i32
    %c0_i32_0 = arith.constant 0 : i32
    %c0_i32_1 = arith.constant 0 : i32
    return %c0_i32, %c0_i32_0 : i32, i32
  }
  func.func @transform_2(%arg0: i32) -> (i32, i32) {
    %c0_i32 = arith.constant 0 : i32
    %c0_i32_0 = arith.constant 0 : i32
    %c0_i32_1 = arith.constant 0 : i32
    return %c0_i32, %c0_i32_0 : i32, i32
  }
  func.func @transform_3(%arg0: i32) -> (i32, i32) {
    %c0_i32 = arith.constant 0 : i32
    %c0_i32_0 = arith.constant 0 : i32
    %c0_i32_1 = arith.constant 0 : i32
    return %c0_i32, %c0_i32_0 : i32, i32
  }
  func.func @transform_4(%arg0: i32) -> (i32, i32) {
    %c0_i32 = arith.constant 0 : i32
    %c0_i32_0 = arith.constant 0 : i32
    %c0_i32_1 = arith.constant 0 : i32
    return %c0_i32, %c0_i32_0 : i32, i32
  }
  func.func @transform_5(%arg0: i32) -> (i32, i32) {
    %c0_i32 = arith.constant 0 : i32
    %c0_i32_0 = arith.constant 0 : i32
    return %arg0, %c0_i32 : i32, i32
  }
}

</mosaic_0001>

<bundles_post_ra>
// kernel: tpu_custom_call.1
= control target key start
LH: loop header
LB: loop body
LE: loop exit
PB: predicated region body
PF: predicated region fallthrough
CT: control target
= control target key end

     0   :  { %v410_v1 = vmov 0   ;;  %vm151_vm0 = vcmask 556032   ;;  %s554_s0 = inlined_call_operand.vmem [shape: bf16[32,196], index: 0, kind: input, shape index: {}]   ;;  %s555_s1 = inlined_call_operand.vmem [shape: bf16[196,32], index: 1, kind: input, shape index: {}]   ;;  %s556_s2 = inlined_call_operand.vmem [shape: f32[1,32], index: 2, kind: input, shape index: {}]   ;;  %s557_s3 = inlined_call_operand.vmem [shape: f32[1,32], index: 3, kind: input, shape index: {}]   ;;  %s558_s4 = inlined_call_operand.vmem [shape: f32[1,32], index: 4, kind: input, shape index: {}]   ;;  %s559_s5 = inlined_call_operand.hbm [shape: f32[32,32], index: 5, kind: output, shape index: {}]  }
   0x1   :  { %v359_v0 = vld [vmem:[%s555_s1] sm:$0xff]   ;;  %162 = vmatprep.subr.bf16.mxu0 %v410_v1  ;;  %329 = vmatprep.subr.bf16.mxu1 %v410_v1  ;;  %v360_v2 = vld [vmem:[%s555_s1 + $0x8] sm:$0xff]   ;;  %v361_v3 = vld [vmem:[%s555_s1 + $0x10] sm:$0xff]  }
   0x2   :  { %163 = vmatpush1.bf16.msra.mxu0 %v359_v0  ;;  %342 = vmatpush1.bf16.msra.mxu1 %v359_v0  ;;  %v362_v4 = vld [vmem:[%s555_s1 + $0x18] sm:$0xff]   ;;  %v374_v5 = vld [vmem:[%s554_s0 + $0x4] ss:$8 sps:$4 sm:$0xff]  }
   0x3   :  { %164 = vmatprep.subr.bf16.mxu0 %v410_v1  ;;  %330 = vmatprep.subr.bf16.mxu1 %v410_v1  ;;  %v363_v6 = vld [vmem:[%s555_s1 + $0x20] sm:$0xff]   ;;  %v377_v7 = vld [vmem:[%s554_s0 + $0x14] ss:$8 sps:$4 sm:$0xff]  }
   0x6   :  { %165 = vmatpush1.bf16.msra.mxu0 %v360_v2  ;;  %343 = vmatpush1.bf16.msra.mxu1 %v360_v2 }
   0x7   :  { %166 = vmatprep.subr.bf16.mxu0 %v410_v1  ;;  %331 = vmatprep.subr.bf16.mxu1 %v410_v1 }
   0xa   :  { %167 = vmatpush1.bf16.msra.mxu0 %v361_v3  ;;  %344 = vmatpush1.bf16.msra.mxu1 %v361_v3 }
   0xb   :  { %168 = vmatprep.subr.bf16.mxu0 %v410_v1  ;;  %332 = vmatprep.subr.bf16.mxu1 %v410_v1 }
   0xe   :  { %169 = vmatpush1.bf16.msra.mxu0 %v362_v4  ;;  %345 = vmatpush1.bf16.msra.mxu1 %v362_v4 }
   0xf   :  { %170 = vmatprep.subr.bf16.mxu0 %v410_v1  ;;  %333 = vmatprep.subr.bf16.mxu1 %v410_v1 }
  0x10   :  { %10 = vsyncpa [#allocation3], 0  ;;  %325 = vmatprep.mubr.msk.bf16.mxu0 %vm151_vm0, %v374_v5  ;;  %326 = vmatprep.mubr.msk.bf16.mxu1 %vm151_vm0, %v377_v7  ;;  %v364_v8 = vld [vmem:[%s555_s1 + $0x28] sm:$0xff]   ;;  %v365_v9 = vld [vmem:[%s555_s1 + $0x30] sm:$0xff]   ;;  %vm158_vm1 = vcmask 1041408   ;;  %vm211_vm2 = vcmask 261120  }
  0x11   :  { %v366_v10 = vld [vmem:[%s555_s1 + $0x38] sm:$0xff]   ;;  %v367_v11 = vld [vmem:[%s555_s1 + $0x40] sm:$0xff]   ;;  %v368_v12 = vld [vmem:[%s555_s1 + $0x48] sm:$0xff]  }
  0x12   :  { %171 = vmatpush1.bf16.msra.mxu0 %v363_v6  ;;  %346 = vmatpush1.bf16.msra.mxu1 %v363_v6  ;;  %v369_v13 = vld [vmem:[%s555_s1 + $0x50] sm:$0xff]   ;;  %v370_v14 = vld [vmem:[%s555_s1 + $0x58] sm:$0xff]   ;;  %v371_v15 = vld [vmem:[%s555_s1 + $0x60] ss:$0 sps:$4 sm:$0x33]  }
  0x13   :  { %172 = vmatprep.subr.bf16.mxu0 %v410_v1  ;;  %334 = vmatprep.subr.bf16.mxu1 %v410_v1  ;;  %v160_v16 = vsel %vm158_vm1, %v371_v15, 0  ;;  %v372_v17 = vld [vmem:[%s554_s0] ss:$8 sps:$4 sm:$0xff]   ;;  %v375_v18 = vld [vmem:[%s554_s0 + $0x10] ss:$8 sps:$4 sm:$0xff]  }
  0x14   :  { %v307_v19 = vld [vmem:[%s556_s2] ss:$0 sm:$0xff] }
  0x15   :  { %v327_v5 = vld [vmem:[%s557_s3] ss:$0 sm:$0xff]  ;;  %s411_s3 = smov [#allocation2]  }
  0x16   :  { %173 = vmatpush1.bf16.msra.mxu0 %v364_v8  ;;  %347 = vmatpush1.bf16.msra.mxu1 %v364_v8  ;;  %v328_v7 = vld [vmem:[%s558_s4] ss:$0 sm:$0xff]  ;;  %s296_s30 = sshll.u32 %s411_s3, 4  ;;  %s297_s30 = int_to_ptr.vmem [resolvable:$true] %s296_s30 }
  0x17   :  { %174 = vmatprep.subr.bf16.mxu0 %v410_v1  ;;  %335 = vmatprep.subr.bf16.mxu1 %v410_v1  ;;  %s386_s4 = scalar_lea.vmem %s297_s30, 512  ;;  %p391_p1 = scmp.lt.s32.totalorder %s297_s30, %s297_s30 }
  0x18   :  { %p387_p0 = scmp.ne.s32.totalorder %s297_s30, %s386_s4  ;;  %p392_p2 = scmp.lt.s32.totalorder %s386_s4, %s386_s4 }
  0x1a   :  { %175 = vmatpush1.bf16.msra.mxu0 %v365_v9  ;;  %348 = vmatpush1.bf16.msra.mxu1 %v365_v9  ;;  %p393_p3 = por %p392_p2, %p391_p1 }
  0x1b   :  { %176 = vmatprep.subr.bf16.mxu0 %v410_v1  ;;  %336 = vmatprep.subr.bf16.mxu1 %v410_v1 }
  0x1c   :  { %p394_p4 = pnand %p393_p3, %p387_p0 }
  0x1e   :  { %177 = vmatpush1.bf16.msra.mxu0 %v366_v10  ;;  %349 = vmatpush1.bf16.msra.mxu1 %v366_v10 }
  0x1f   :  { %178 = vmatprep.subr.bf16.mxu0 %v410_v1  ;;  %337 = vmatprep.subr.bf16.mxu1 %v410_v1 }
  0x22   :  { %179 = vmatpush1.bf16.msra.mxu0 %v367_v11  ;;  %350 = vmatpush1.bf16.msra.mxu1 %v367_v11 }
  0x23   :  { %180 = vmatprep.subr.bf16.mxu0 %v410_v1  ;;  %338 = vmatprep.subr.bf16.mxu1 %v410_v1 }
  0x26   :  { %181 = vmatpush1.bf16.msra.mxu0 %v368_v12  ;;  %351 = vmatpush1.bf16.msra.mxu1 %v368_v12 }
  0x27   :  { %182 = vmatprep.subr.bf16.mxu0 %v410_v1  ;;  %339 = vmatprep.subr.bf16.mxu1 %v410_v1 }
  0x2a   :  { %183 = vmatpush1.bf16.msra.mxu0 %v369_v13  ;;  %352 = vmatpush1.bf16.msra.mxu1 %v369_v13 }
  0x2b   :  { %184 = vmatprep.subr.bf16.mxu0 %v410_v1  ;;  %340 = vmatprep.subr.bf16.mxu1 %v410_v1 }
  0x2e   :  { %185 = vmatpush1.bf16.msra.mxu0 %v370_v14  ;;  %353 = vmatpush1.bf16.msra.mxu1 %v370_v14 }
  0x2f   :  { %186 = vmatprep.subr.bf16.mxu0 %v410_v1  ;;  %341 = vmatprep.subr.bf16.mxu1 %v410_v1 }
  0x32   :  { %187 = vmatpush1.bf16.msra.mxu0 %v160_v16  ;;  %354 = vmatpush1.bf16.msra.mxu1 %v160_v16 }
  0x35   :  { %195 = vmatmul.mubr.bf16.vlgmr.msra.gmra.mrb[0].mxu0 %v372_v17  ;;  %203 = vmatmul.mubr.bf16.vlgmr.msra.gmra.mrb[0].mxu1 %v375_v18 }
 0x108   :  { %v196_v20 = vpop.f32.mrb[0].mxu0  ;;  %v204_v21 = vpop.f32.mrb[0].mxu1 }
 0x109   :  { %v197_v22 = vadd.f32 %v307_v19, %v196_v20  ;;  %v205_v23 = vadd.f32 %v307_v19, %v204_v21  ;;  %v198_v24 = vpop.f32.mrb[1].mxu0  ;;  %v206_v25 = vpop.f32.mrb[1].mxu1 }
 0x10a   :  { %v199_v26 = vpop.f32.mrb[2].mxu0  ;;  %v207_v27 = vpop.f32.mrb[2].mxu1 }
 0x10b   :  { %v200_v28 = vadd.f32 %v307_v19, %v199_v26  ;;  %v201_v29 = vpop.f32.mrb[3].mxu0  ;;  %v208_v30 = vadd.f32 %v307_v19, %v207_v27  ;;  %v209_v31 = vpop.f32.mrb[3].mxu1  ;;  %v218_v32 = vsel %vm211_vm2, %v205_v23, 0.0  ;;  %v212_v33 = vsel %vm211_vm2, %v197_v22, 0.0 }
 0x10c   :  { %219 = vadd.xlane.f32.xlu1 %v218_v32  ;;  %213 = vadd.xlane.f32.xlu0 %v212_v33 }
 0x10d   :  { %v221_v34 = vsel %vm211_vm2, %v208_v30, 0.0  ;;  %v215_v35 = vsel %vm211_vm2, %v200_v28, 0.0 }
 0x110   :  { %222 = vadd.xlane.f32.xlu1 %v221_v34  ;;  %216 = vadd.xlane.f32.xlu0 %v215_v35 }
 0x199   :  { %v220_v36 = vpop.xlane.xlu1 %219  ;;  %v214_v37 = vpop.xlane.xlu0 %213 }
 0x19a   :  { %v227_v38 = vmul.f32 0.03125, %v220_v36  ;;  %v225_v39 = vmul.f32 0.03125, %v214_v37 }
 0x19c   :  { %v231_v40 = vsub.f32 %v205_v23, %v227_v38  ;;  %v229_v41 = vsub.f32 %v197_v22, %v225_v39 }
 0x19d   :  { %v223_v42 = vpop.xlane.xlu1 %222  ;;  %v217_v43 = vpop.xlane.xlu0 %216 }
 0x19e   :  { %v228_v44 = vmul.f32 0.03125, %v223_v42  ;;  %v226_v45 = vmul.f32 0.03125, %v217_v43  ;;  %v233_v46 = vmul.f32 %v229_v41, %v229_v41  ;;  %v235_v50 = vmul.f32 %v231_v40, %v231_v40 }
 0x1a0   :  { %v232_v47 = vsub.f32 %v208_v30, %v228_v44  ;;  %v230_v48 = vsub.f32 %v200_v28, %v226_v45  ;;  %v237_v49 = vsel %vm211_vm2, %v233_v46, 0.0  ;;  %v243_v52 = vsel %vm211_vm2, %v235_v50, 0.0 }
 0x1a1   :  { %238 = vadd.xlane.f32.xlu0 %v237_v49 }
 0x1a2   :  { %v234_v51 = vmul.f32 %v230_v48, %v230_v48  ;;  %v236_v54 = vmul.f32 %v232_v47, %v232_v47 }
 0x1a4   :  { %v240_v53 = vsel %vm211_vm2, %v234_v51, 0.0  ;;  %v246_v55 = vsel %vm211_vm2, %v236_v54, 0.0 }
 0x1a5   :  { %244 = vadd.xlane.f32.xlu0 %v243_v52  ;;  %241 = vadd.xlane.f32.xlu1 %v240_v53 }
 0x1a9   :  { %247 = vadd.xlane.f32.xlu1 %v246_v55 }
 0x22e   :  { %v239_v56 = vpop.xlane.xlu0 %238 }
 0x22f   :  { %v249_v57 = vmul.f32 0.03125, %v239_v56 }
 0x231   :  { %v253_v58 = vadd.f32 1e-05, %v249_v57 }
 0x232   :  { %v242_v59 = vpop.xlane.xlu1 %241  ;;  %v245_v60 = vpop.xlane.xlu0 %244 }
 0x233   :  { %378 = vrsqrt.f32 %v253_v58  ;;  %v250_v61 = vmul.f32 0.03125, %v242_v59  ;;  %v251_v62 = vmul.f32 0.03125, %v245_v60 }
 0x235   :  { %v254_v63 = vadd.f32 1e-05, %v250_v61  ;;  %v255_v0 = vadd.f32 1e-05, %v251_v62 }
 0x236   :  { %v248_v1 = vpop.xlane.xlu1 %247 }
 0x237   :  { %380 = vrsqrt.f32 %v254_v63  ;;  %v252_v2 = vmul.f32 0.03125, %v248_v1 }
 0x238   :  { %382 = vrsqrt.f32 %v255_v0 }
 0x239   :  { %v256_v3 = vadd.f32 1e-05, %v252_v2 }
 0x23b   :  { %384 = vrsqrt.f32 %v256_v3 }
 0x23d   :  { %v379_v4 = vpop.eup %378 }
 0x23e   :  { %v261_v6 = vmul.f32 %v379_v4, %v229_v41 }
 0x240   :  { %v272_v8 = vmul.f32 %v327_v5, %v261_v6 }
 0x241   :  { %v381_v9 = vpop.eup %380 }
 0x242   :  { %v383_v10 = vpop.eup %382  ;;  %v283_v11 = vadd.f32 %v328_v7, %v272_v8  ;;  %v262_v12 = vmul.f32 %v381_v9, %v230_v48 }
 0x243   :  { %v263_v13 = vmul.f32 %v383_v10, %v231_v40 }
 0x244   :  { %287 = vst.msk [vmem:[#allocation2] sm:$0xff] %vm211_vm2, %v283_v11  ;;  %v273_v14 = vmul.f32 %v327_v5, %v262_v12 }
 0x245   :  { %v385_v15 = vpop.eup %384  ;;  %v274_v16 = vmul.f32 %v327_v5, %v263_v13 }
 0x246   :  { %v284_v17 = vadd.f32 %v328_v7, %v273_v14  ;;  %v264_v18 = vmul.f32 %v385_v15, %v232_v47 }
 0x247   :  { %v285_v19 = vadd.f32 %v328_v7, %v274_v16 }
 0x248   :  { %288 = vst.msk [vmem:[#allocation2 + $0x8] sm:$0xff] %vm211_vm2, %v284_v17  ;;  %v275_v20 = vmul.f32 %v327_v5, %v264_v18 }
 0x249   :  { %289 = vst.msk [vmem:[#allocation2 + $0x10] sm:$0xff] %vm211_vm2, %v285_v19 }
 0x24a   :  { %v286_v21 = vadd.f32 %v328_v7, %v275_v20 }
 0x24c   :  { %290 = vst.msk [vmem:[#allocation2 + $0x18] sm:$0xff] %vm211_vm2, %v286_v21 }
 0x24d   :  { %397 = shalt.err (!%p394_p4)
}
 0x24e   :  { %s398_s8 = scalar_lea.hbm %s559_s5, 512 }
 0x24f   :  { %p399_p5 = scmp.ne.s32.totalorder %s559_s5, %s398_s8  ;;  %p402_p6 = scmp.lt.u32.totalorder %s398_s8, %s559_s5 }
 0x251   :  { %p404_p7 = pnand %p402_p6, %p399_p5 }
 0x253   :  { %407 = shalt.err (!%p404_p7)
}
 0x254   :  { %s412_s13 = smov 128   ;;  %s413_s14 = smov 8  }
 0x255   :  { %302 = dma.vmem_to_hbm [thread:$0]  %s297_s30, 512, %s559_s5, [#allocation3], %s412_s13, %s412_s13, %s413_s14  }
 0x256   :  { %408 = dma.done.wait [#allocation3], 512  }
 0x257   :  { %409 = vsyncadd [#allocation3], 4294966784 }
 0x258   :  { %306 = vsyncpa [#allocation3], 1 }

</bundles_post_ra>
